<compile_context>
chip_gen: v6e
topology: v6e:2x2x1
jax: 0.10.0
libtpu: 0.0.40
codegen_flags: <defaults>
</compile_context>

<pallas_src>
import jax
import jax.numpy as jnp
from jax import lax
from jax.experimental import pallas as pl
from jax.experimental.pallas import tpu as pltpu


def _round_up(n, m):
    return (n + m - 1) // m * m


def _costnn_kernel(x_ref, w1_ref, b1_ref, w2_ref, b2_ref, w3_ref, b3_ref, o_ref):
    # x_ref: (TILE_B, D) f32; weights bf16 (already transposed / padded in the
    # wrapper); biases f32 columns; o_ref: (1, O, TILE_B) f32 (batch in lanes).
    xb = x_ref[...].astype(jnp.bfloat16)          # cast in-kernel; no wrapper pass

    # Layer 1: contract the D (minor) dims of both operands -> (H1p, TILE_B).
    # Same dimension numbers as q @ k^T in flash attention; batch lands in lanes.
    h1 = lax.dot_general(w1_ref[...], xb,
                         dimension_numbers=(((1,), (1,)), ((), ())),
                         preferred_element_type=jnp.float32)
    h1 = jnp.maximum(h1 + b1_ref[...], 0.0)       # f32 bias/ReLU (v5e-safe)

    # Layer 2: (H2p, H1p) @ (H1p, TILE_B) -> (H2p, TILE_B).
    h2 = jnp.dot(w2_ref[...], h1.astype(jnp.bfloat16),
                 preferred_element_type=jnp.float32)
    h2 = jnp.maximum(h2 + b2_ref[...], 0.0)

    # Layer 3: (Op, H2p) @ (H2p, TILE_B) -> (Op, TILE_B); keep the first O rows.
    h3 = jnp.dot(w3_ref[...], h2.astype(jnp.bfloat16),
                 preferred_element_type=jnp.float32)
    o = o_ref.shape[1]
    o_ref[0] = (h3[:o, :] + b3_ref[...]).astype(o_ref.dtype)   # lane-dense store


def costnn_forward(x, params, *, max_tile_rows=8192, xla_fallback_rows=0):
    """x: (B, state_dim) float. params: w1,b1,w2,b2,w3,b3 with weights as (in, out).

    xla_fallback_rows: batches below this size go through plain XLA (pallas_call
    fixed overhead + 128-row padding dwarfs the work for tiny B). Disabled (0)
    by default so the kernel path is always exercised here; ~256-512 is a good
    value when CostNN is embedded in a larger graph.
    """
    w1, b1 = params["w1"], params["b1"]
    w2, b2 = params["w2"], params["b2"]
    w3, b3 = params["w3"], params["b3"]
    B, D = x.shape
    H1, H2, O = w1.shape[1], w2.shape[1], w3.shape[1]

    if B < xla_fallback_rows:
        h1 = jnp.maximum(x @ w1 + b1, 0.0)
        h2 = jnp.maximum(h1 @ w2 + b2, 0.0)
        return h2 @ w3 + b3

    # ---- batch tiling: >= 2 (even) grid steps when B > 128 so both v7x
    # TensorCores get work; large tiles amortize per-step overhead on v5e/v6e.
    num_tiles = max(1, pl.cdiv(B, max_tile_rows))
    if B > 128:
        num_tiles = max(2, num_tiles)
        num_tiles += num_tiles % 2                     # even split across 2 TCs
    tile_b = min(_round_up(max_tile_rows, 128),
                 _round_up(pl.cdiv(B, num_tiles), 128))
    num_tiles = pl.cdiv(B, tile_b)
    b_pad = num_tiles * tile_b
    if b_pad != B:
        # Only materializes a copy when B is not a tile multiple (no dtype cast).
        x = jnp.pad(x, ((0, b_pad - B), (0, 0)))

    # ---- one-time (tiny) weight transpose / pad / cast. Pads are sublane-only.
    H1p = _round_up(H1, 16)                            # bf16 sublane packing: 24 -> 32
    H2p = _round_up(H2, 16)                            # 16 -> 16
    Op = _round_up(O, 16)                              # only first O rows are stored
    w1t = jnp.pad(w1.T, ((0, H1p - H1), (0, 0))).astype(jnp.bfloat16)         # (H1p, D)
    w2t = jnp.pad(w2.T, ((0, H2p - H2), (0, H1p - H1))).astype(jnp.bfloat16)  # (H2p, H1p)
    w3t = jnp.pad(w3.T, ((0, Op - O), (0, H2p - H2))).astype(jnp.bfloat16)    # (Op, H2p)
    b1c = jnp.pad(b1.reshape(H1, 1), ((0, H1p - H1), (0, 0))).astype(jnp.float32)
    b2c = jnp.pad(b2.reshape(H2, 1), ((0, H2p - H2), (0, 0))).astype(jnp.float32)
    # b3 kept as a tiny VMEM-resident column; an SMEM scalar would also work but
    # the difference is negligible (one resident vreg, DMA'd once).
    b3c = b3.reshape(O, 1).astype(jnp.float32)

    def const_spec(shape):                             # VMEM-resident constants
        return pl.BlockSpec(shape, lambda *idx: (0,) * len(shape))

    flops = 2 * B * (D * H1 + H1 * H2 + H2 * O)
    bytes_accessed = int(x.size * x.dtype.itemsize + B * O * 4
                         + (w1t.size + w2t.size + w3t.size) * 2
                         + (b1c.size + b2c.size + b3c.size) * 4)
    cost = pl.CostEstimate(flops=flops, transcendentals=0,
                           bytes_accessed=bytes_accessed)

    out = pl.pallas_call(
        _costnn_kernel,
        out_shape=jax.ShapeDtypeStruct((num_tiles, O, tile_b), jnp.float32),
        grid=(num_tiles,),
        in_specs=[
            pl.BlockSpec((tile_b, D), lambda i: (i, 0)),   # x: tiled over batch (f32)
            const_spec((H1p, D)),                          # W1^T
            const_spec((H1p, 1)),                          # b1 column
            const_spec((H2p, H1p)),                        # W2^T
            const_spec((H2p, 1)),                          # b2 column
            const_spec((Op, H2p)),                         # W3^T rows
            const_spec((O, 1)),                            # b3 column
        ],
        out_specs=pl.BlockSpec((1, O, tile_b), lambda i: (i, 0, 0)),
        compiler_params=pltpu.CompilerParams(
            dimension_semantics=("parallel",),             # v7x: shard steps over 2 TCs
        ),
        cost_estimate=cost,
    )(x, w1t, b1c, w2t, b2c, w3t, b3c)

    # (num_tiles, O, tile_b), batch in lanes -> (B, O).
    if O == 1:
        return out.reshape(b_pad)[:B].reshape(B, 1)
    return jnp.transpose(out, (0, 2, 1)).reshape(b_pad, O)[:B]


def init_costnn_params(key, state_dim, out_features=1, hidden_dim1=24, hidden_dim2=16):
    """Deterministic PyTorch-style init: U(-1/sqrt(fan_in), 1/sqrt(fan_in))."""
    ks = jax.random.split(key, 6)

    def lin(kw, kb, fan_in, fan_out):
        bound = 1.0 / jnp.sqrt(jnp.float32(fan_in))
        w = jax.random.uniform(kw, (fan_in, fan_out), jnp.float32, -bound, bound)
        b = jax.random.uniform(kb, (1, fan_out), jnp.float32, -bound, bound)
        return w, b

    w1, b1 = lin(ks[0], ks[1], state_dim, hidden_dim1)
    w2, b2 = lin(ks[2], ks[3], hidden_dim1, hidden_dim2)
    w3, b3 = lin(ks[4], ks[5], hidden_dim2, out_features)
    return {"w1": w1, "b1": b1, "w2": w2, "b2": b2, "w3": w3, "b3": b3}


def costnn_reference_f32(x, p):
    h1 = jnp.maximum(x @ p["w1"] + p["b1"], 0.0)
    h2 = jnp.maximum(h1 @ p["w2"] + p["b2"], 0.0)
    return h2 @ p["w3"] + p["b3"]


def costnn_reference_bf16(x, p):
    # Same quantization scheme as the kernel: bf16 dot operands, f32 accumulation,
    # f32 bias-add / ReLU.
    c = lambda a: a.astype(jnp.bfloat16)
    h1 = jnp.dot(c(x), c(p["w1"]), preferred_element_type=jnp.float32) + p["b1"]
    h1 = jnp.maximum(h1, 0.0)
    h2 = jnp.dot(c(h1), c(p["w2"]), preferred_element_type=jnp.float32) + p["b2"]
    h2 = jnp.maximum(h2, 0.0)
    return jnp.dot(c(h2), c(p["w3"]), preferred_element_type=jnp.float32) + p["b3"]


if __name__ == "__main__":
    key = jax.random.PRNGKey(0)
    k_x, k_p, k_x2 = jax.random.split(key, 3)

    state_dim = 32  # state_shape = (32,)
    params = init_costnn_params(k_p, state_dim)
    forward = jax.jit(costnn_forward)

    # Small single-tile case (batch = 8).
    x = jax.random.normal(k_x, (8, state_dim), jnp.float32)
    out = jax.block_until_ready(forward(x, params))
    assert out.shape == (8, 1), out.shape
    ref_bf16 = costnn_reference_bf16(x, params)
    assert jnp.allclose(out, ref_bf16, atol=2e-3, rtol=2e-3), "mismatch vs bf16 reference (B=8)"
    ref_f32 = costnn_reference_f32(x, params)
    assert jnp.allclose(out, ref_f32, atol=1e-1, rtol=1e-1), "mismatch vs f32 reference (B=8)"

    # Multi-tile case: 2 "parallel" grid steps, ragged batch (padded last tile).
    x2 = jax.random.normal(k_x2, (200, state_dim), jnp.float32)
    out2 = jax.block_until_ready(forward(x2, params))
    assert out2.shape == (200, 1), out2.shape
    ref2 = costnn_reference_bf16(x2, params)
    assert jnp.allclose(out2, ref2, atol=2e-3, rtol=2e-3), "mismatch vs bf16 reference (B=200)"

    print("KERNEL_OK")
</pallas_src>

<mosaic_0001>
module attributes {stable_mosaic.version = 11 : i64} {
  func.func @_costnn_kernel(%arg0: i32, %arg1: memref<128x32xf32, #tpu.memory_space<vmem>>, %arg2: memref<32x32xbf16, #tpu.memory_space<vmem>>, %arg3: memref<32x1xf32, #tpu.memory_space<vmem>>, %arg4: memref<16x32xbf16, #tpu.memory_space<vmem>>, %arg5: memref<16x1xf32, #tpu.memory_space<vmem>>, %arg6: memref<16x16xbf16, #tpu.memory_space<vmem>>, %arg7: memref<1x1xf32, #tpu.memory_space<vmem>>, %arg8: memref<1x1x128xf32, #tpu.memory_space<vmem>>) attributes {dimension_semantics = [#tpu.dimension_semantics<parallel>], iteration_bounds = array<i64: 1>, scalar_prefetch = 0 : i64, scratch_operands = 0 : i64, tpu.core_type = #tpu.core_type<tc>, window_params = [{transform_indices = @transform_0, window_bounds = array<i64: 128, 32>}, {pipeline_mode = #tpu.pipeline_mode<synchronous>, transform_indices = @transform_1, window_bounds = array<i64: 32, 32>}, {pipeline_mode = #tpu.pipeline_mode<synchronous>, transform_indices = @transform_2, window_bounds = array<i64: 32, 1>}, {pipeline_mode = #tpu.pipeline_mode<synchronous>, transform_indices = @transform_3, window_bounds = array<i64: 16, 32>}, {pipeline_mode = #tpu.pipeline_mode<synchronous>, transform_indices = @transform_4, window_bounds = array<i64: 16, 1>}, {pipeline_mode = #tpu.pipeline_mode<synchronous>, transform_indices = @transform_5, window_bounds = array<i64: 16, 16>}, {pipeline_mode = #tpu.pipeline_mode<synchronous>, transform_indices = @transform_6, window_bounds = array<i64: 1, 1>}, {transform_indices = @transform_7, window_bounds = array<i64: 1, 1, 128>}]} {
    %c0 = arith.constant 0 : index
    %c0_0 = arith.constant 0 : index
    %0 = vector.load %arg1[%c0, %c0_0] : memref<128x32xf32, #tpu.memory_space<vmem>>, vector<128x32xf32>
    %1 = arith.truncf %0 : vector<128x32xf32> to vector<128x32xbf16>
    %c0_1 = arith.constant 0 : index
    %c0_2 = arith.constant 0 : index
    %2 = vector.load %arg2[%c0_1, %c0_2] : memref<32x32xbf16, #tpu.memory_space<vmem>>, vector<32x32xbf16>
    %cst = arith.constant dense<0.000000e+00> : vector<32x128xf32>
    %3 = tpu.matmul %2, %1, %cst {dimension_numbers = #tpu.dot_dimension_numbers<[1], [1], [0], [0], [0, 0, 1, 0], [], []>} : vector<32x32xbf16>, vector<128x32xbf16>, vector<32x128xf32> -> vector<32x128xf32>
    %c0_3 = arith.constant 0 : index
    %c0_4 = arith.constant 0 : index
    %4 = vector.load %arg3[%c0_3, %c0_4] : memref<32x1xf32, #tpu.memory_space<vmem>>, vector<32x1xf32>
    %5 = vector.broadcast %4 : vector<32x1xf32> to vector<32x128xf32>
    %6 = arith.addf %3, %5 : vector<32x128xf32>
    %cst_5 = arith.constant 0.000000e+00 : f32
    %7 = vector.broadcast %cst_5 : f32 to vector<32x128xf32>
    %8 = arith.maximumf %6, %7 : vector<32x128xf32>
    %c0_6 = arith.constant 0 : index
    %c0_7 = arith.constant 0 : index
    %9 = vector.load %arg4[%c0_6, %c0_7] : memref<16x32xbf16, #tpu.memory_space<vmem>>, vector<16x32xbf16>
    %10 = arith.truncf %8 : vector<32x128xf32> to vector<32x128xbf16>
    %cst_8 = arith.constant dense<0.000000e+00> : vector<16x128xf32>
    %11 = tpu.matmul %9, %10, %cst_8 {dimension_numbers = #tpu.dot_dimension_numbers<[1], [0], [0], [1], [0, 0, 1, 1], [], []>} : vector<16x32xbf16>, vector<32x128xbf16>, vector<16x128xf32> -> vector<16x128xf32>
    %c0_9 = arith.constant 0 : index
    %c0_10 = arith.constant 0 : index
    %12 = vector.load %arg5[%c0_9, %c0_10] : memref<16x1xf32, #tpu.memory_space<vmem>>, vector<16x1xf32>
    %13 = vector.broadcast %12 : vector<16x1xf32> to vector<16x128xf32>
    %14 = arith.addf %11, %13 : vector<16x128xf32>
    %cst_11 = arith.constant 0.000000e+00 : f32
    %15 = vector.broadcast %cst_11 : f32 to vector<16x128xf32>
    %16 = arith.maximumf %14, %15 : vector<16x128xf32>
    %c0_12 = arith.constant 0 : index
    %c0_13 = arith.constant 0 : index
    %17 = vector.load %arg6[%c0_12, %c0_13] : memref<16x16xbf16, #tpu.memory_space<vmem>>, vector<16x16xbf16>
    %18 = arith.truncf %16 : vector<16x128xf32> to vector<16x128xbf16>
    %cst_14 = arith.constant dense<0.000000e+00> : vector<16x128xf32>
    %19 = tpu.matmul %17, %18, %cst_14 {dimension_numbers = #tpu.dot_dimension_numbers<[1], [0], [0], [1], [0, 0, 1, 1], [], []>} : vector<16x16xbf16>, vector<16x128xbf16>, vector<16x128xf32> -> vector<16x128xf32>
    %20 = vector.extract_strided_slice %19 {offsets = [0, 0], sizes = [1, 128], strides = [1, 1]} : vector<16x128xf32> to vector<1x128xf32>
    %c0_15 = arith.constant 0 : index
    %c0_16 = arith.constant 0 : index
    %21 = vector.load %arg7[%c0_15, %c0_16] : memref<1x1xf32, #tpu.memory_space<vmem>>, vector<1x1xf32>
    %22 = vector.broadcast %21 : vector<1x1xf32> to vector<1x128xf32>
    %23 = arith.addf %20, %22 : vector<1x128xf32>
    %c0_17 = arith.constant 0 : index
    %c0_18 = arith.constant 0 : index
    %c0_19 = arith.constant 0 : index
    %24 = vector.load %arg8[%c0_17, %c0_18, %c0_19] : memref<1x1x128xf32, #tpu.memory_space<vmem>>, vector<1x1x128xf32>
    %25 = vector.shape_cast %24 : vector<1x1x128xf32> to vector<1x128xf32>
    %26 = vector.shape_cast %23 : vector<1x128xf32> to vector<1x1x128xf32>
    tpu.vector_store %arg8[%c0_17, %c0_18, %c0_19], %26 {strides = array<i32>} : memref<1x1x128xf32, #tpu.memory_space<vmem>>, vector<1x1x128xf32>,
    return
  }
  func.func @transform_0(%arg0: i32) -> (i32, i32) {
    %c0_i32 = arith.constant 0 : i32
    %c0_i32_0 = arith.constant 0 : i32
    return %arg0, %c0_i32 : i32, i32
  }
  func.func @transform_1(%arg0: i32) -> (i32, i32) {
    %c0_i32 = arith.constant 0 : i32
    %c0_i32_0 = arith.constant 0 : i32
    %c0_i32_1 = arith.constant 0 : i32
    return %c0_i32, %c0_i32_0 : i32, i32
  }
  func.func @transform_2(%arg0: i32) -> (i32, i32) {
    %c0_i32 = arith.constant 0 : i32
    %c0_i32_0 = arith.constant 0 : i32
    %c0_i32_1 = arith.constant 0 : i32
    return %c0_i32, %c0_i32_0 : i32, i32
  }
  func.func @transform_3(%arg0: i32) -> (i32, i32) {
    %c0_i32 = arith.constant 0 : i32
    %c0_i32_0 = arith.constant 0 : i32
    %c0_i32_1 = arith.constant 0 : i32
    return %c0_i32, %c0_i32_0 : i32, i32
  }
  func.func @transform_4(%arg0: i32) -> (i32, i32) {
    %c0_i32 = arith.constant 0 : i32
    %c0_i32_0 = arith.constant 0 : i32
    %c0_i32_1 = arith.constant 0 : i32
    return %c0_i32, %c0_i32_0 : i32, i32
  }
  func.func @transform_5(%arg0: i32) -> (i32, i32) {
    %c0_i32 = arith.constant 0 : i32
    %c0_i32_0 = arith.constant 0 : i32
    %c0_i32_1 = arith.constant 0 : i32
    return %c0_i32, %c0_i32_0 : i32, i32
  }
  func.func @transform_6(%arg0: i32) -> (i32, i32) {
    %c0_i32 = arith.constant 0 : i32
    %c0_i32_0 = arith.constant 0 : i32
    %c0_i32_1 = arith.constant 0 : i32
    return %c0_i32, %c0_i32_0 : i32, i32
  }
  func.func @transform_7(%arg0: i32) -> (i32, i32, i32) {
    %c0_i32 = arith.constant 0 : i32
    %c0_i32_0 = arith.constant 0 : i32
    %c0_i32_1 = arith.constant 0 : i32
    return %arg0, %c0_i32, %c0_i32_0 : i32, i32, i32
  }
}

</mosaic_0001>

<bundles_post_ra>
// kernel: costnn_forward.1
= control target key start
LH: loop header
LB: loop body
LE: loop exit
PB: predicated region body
PF: predicated region fallthrough
CT: control target
= control target key end

     0   :  { %vm91_vm0 = vcmask 261120   ;;  %v384_v3 = vmov 0   ;;  %v385_v43 = vmov 0.0   ;;  %vm386_vm1 = vmmov 0   ;;  %s532_s0 = inlined_call_operand.vmem [shape: f32[128,32], index: 0, kind: input, shape index: {}]   ;;  %s533_s6 = inlined_call_operand.<no memory space> [shape: f32[1,1], index: 6, kind: input, shape index: {}]   ;;  %s534_s1 = inlined_call_operand.vmem [shape: bf16[32,32], index: 1, kind: input, shape index: {}]   ;;  %s535_s2 = inlined_call_operand.vmem [shape: f32[32,1], index: 2, kind: input, shape index: {}]   ;;  %s536_s4 = inlined_call_operand.vmem [shape: f32[16,1], index: 4, kind: input, shape index: {}]   ;;  %s537_s3 = inlined_call_operand.vmem [shape: bf16[16,32], index: 3, kind: input, shape index: {}]   ;;  %s538_s5 = inlined_call_operand.vmem [shape: bf16[16,16], index: 5, kind: input, shape index: {}]   ;;  %s539_s7 = inlined_call_operand.vmem [shape: f32[1,1,128], index: 7, kind: output, shape index: {}]  }
   0x1   :  { %v43_v0 = vld [vmem:[%s532_s0 + $0x70] sm:$0xff]  ;;  %v44_v1 = vld [vmem:[%s532_s0 + $0x78] sm:$0xff]  ;;  %v41_v2 = vld [vmem:[%s532_s0 + $0x60] sm:$0xff]  ;;  %378 = vset.pattern.permute.xlu0 %v384_v3  ;;  %379 = vset.pattern.permute.xlu1 %v384_v3  ;;  %v12_v4 = vstv %s533_s6  ;;  %vm250_vm2 = vcmask 130048  }
   0x2   :  { %v52_v5 = vpack.c.bf16 %v44_v1, %v43_v0  ;;  %v42_v6 = vld [vmem:[%s532_s0 + $0x68] sm:$0xff]  ;;  %13 = vst [vmem:[#allocation2] sm:$0x1] %v12_v4  ;;  %v39_v9 = vld [vmem:[%s532_s0 + $0x50] sm:$0xff]  ;;  %v40_v10 = vld [vmem:[%s532_s0 + $0x58] sm:$0xff]  ;;  %353 = vmatprep.subr.bf16.mxu1 %v385_v43  ;;  %357 = vmatprep.mubr.msk.bf16.mxu1 %vm386_vm1, %v385_v43 }
   0x3   :  { %v51_v7 = vpack.c.bf16 %v42_v6, %v41_v2  ;;  %v380_v11 = vld [vmem:[%s534_s1] sm:$0xff]   ;;  %v59_v12 = vld [vmem:[%s535_s2 + $0x10] sm:$0xff]  ;;  %v50_v15 = vpack.c.bf16 %v40_v10, %v39_v9  ;;  %v60_v16 = vld [vmem:[%s535_s2 + $0x18] sm:$0xff] }
   0x4   :  { %367 = vmatprep.subr.msk.bf16.mxu0 %vm91_vm0, %v52_v5  ;;  %v120_v8 = vsel %vm91_vm0, %v52_v5, 0  ;;  %349 = vmatprep.mubr.msk.bf16.mxu0 %vm91_vm0, %v380_v11  ;;  %v57_v13 = vld [vmem:[%s535_s2] sm:$0xff]  ;;  %v58_v17 = vld [vmem:[%s535_s2 + $0x8] sm:$0xff]  ;;  %v35_v25 = vld [vmem:[%s532_s0 + $0x30] sm:$0xff]  ;;  %v300_v11 = vlaneseq }
   0x5   :  { %334 = vmatpush3.bf16.xpose.msra.mxu0 %v120_v8  ;;  %73 = vperm.xlu0 %378, %v59_v12   ;;  %v117_v14 = vsel %vm91_vm0, %v51_v7, 0  ;;  %v179_v18 = vld [vmem:[%s536_s4] sm:$0xff]  ;;  %v38_v20 = vld [vmem:[%s532_s0 + $0x48] sm:$0xff]  ;;  %v114_v22 = vsel %vm91_vm0, %v50_v15, 0  ;;  %v36_v26 = vld [vmem:[%s532_s0 + $0x38] sm:$0xff] }
   0x6   :  { %368 = vmatprep.subr.msk.bf16.mxu0 %vm91_vm0, %v51_v7  ;;  %63 = vperm.xlu1 %379, %v57_v13   ;;  %v37_v19 = vld [vmem:[%s532_s0 + $0x40] sm:$0xff]  ;;  %v180_v21 = vld [vmem:[%s536_s4 + $0x8] sm:$0xff]  ;;  %v48_v28 = vpack.c.bf16 %v36_v26, %v35_v25  ;;  %v31_v33 = vld [vmem:[%s532_s0 + $0x10] sm:$0xff]  ;;  %v301_v12 = vshrl.u32 %v300_v11, 7 }
   0x7   :  { %v49_v23 = vpack.c.bf16 %v38_v20, %v37_v19  ;;  %v33_v29 = vld [vmem:[%s532_s0 + $0x20] sm:$0xff]  ;;  %v34_v30 = vld [vmem:[%s532_s0 + $0x28] sm:$0xff]  ;;  %v32_v34 = vld [vmem:[%s532_s0 + $0x18] sm:$0xff] }
   0x8   :  { %v108_v31 = vsel %vm91_vm0, %v48_v28, 0  ;;  %v47_v32 = vpack.c.bf16 %v34_v30, %v33_v29  ;;  %v46_v36 = vpack.c.bf16 %v32_v34, %v31_v33  ;;  %v29_v37 = vld [vmem:[%s532_s0] sm:$0xff]  ;;  %v30_v38 = vld [vmem:[%s532_s0 + $0x8] sm:$0xff]  ;;  %v302_v13 = vsub.s32 0, %v301_v12 }
   0x9   :  { %78 = vperm.xlu0 %378, %v60_v16   ;;  %v294_v24 = vld [vmem:[#allocation2] sm:$0x1]  ;;  %v111_v27 = vsel %vm91_vm0, %v49_v23, 0  ;;  %v45_v40 = vpack.c.bf16 %v30_v38, %v29_v37  ;;  %v381_v42 = vld [vmem:[%s534_s1 + $0x8] sm:$0xff]  }
   0xa   :  { %68 = vperm.xlu1 %379, %v58_v17   ;;  %v105_v35 = vsel %vm91_vm0, %v47_v32, 0  ;;  %v102_v39 = vsel %vm91_vm0, %v46_v36, 0  ;;  %v382_v62 = vld [vmem:[%s537_s3] sm:$0xff]  }
   0xb   :  { %v99_v41 = vsel %vm91_vm0, %v45_v40, 0  ;;  %v383_v10 = vld [vmem:[%s538_s5] sm:$0xff]  }
   0xd   :  { %336 = vmatpush3.bf16.xpose.msra.mxu0 %v117_v14  ;;  %183 = vperm.xlu0 %378, %v179_v18  }
   0xe   :  { %369 = vmatprep.subr.msk.bf16.mxu0 %vm91_vm0, %v50_v15  ;;  %188 = vperm.xlu1 %379, %v180_v21  }
  0x11   :  { %297 = vperm.xlu0 %378, %v294_v24  }
  0x15   :  { %338 = vmatpush3.bf16.xpose.msra.mxu0 %v114_v22 }
  0x16   :  { %370 = vmatprep.subr.msk.bf16.mxu0 %vm91_vm0, %v49_v23 }
  0x1d   :  { %340 = vmatpush3.bf16.xpose.msra.mxu0 %v111_v27 }
  0x1e   :  { %371 = vmatprep.subr.msk.bf16.mxu0 %vm91_vm0, %v48_v28 }
  0x25   :  { %342 = vmatpush3.bf16.xpose.msra.mxu0 %v108_v31 }
  0x26   :  { %372 = vmatprep.subr.msk.bf16.mxu0 %vm91_vm0, %v47_v32 }
  0x2d   :  { %344 = vmatpush3.bf16.xpose.msra.mxu0 %v105_v35 }
  0x2e   :  { %373 = vmatprep.subr.msk.bf16.mxu0 %vm91_vm0, %v46_v36 }
  0x35   :  { %346 = vmatpush3.bf16.xpose.msra.mxu0 %v102_v39 }
  0x36   :  { %374 = vmatprep.subr.msk.bf16.mxu0 %vm91_vm0, %v45_v40 }
  0x3d   :  { %348 = vmatpush3.bf16.xpose.msra.mxu0 %v99_v41 }
  0x44   :  { %350 = vmatmul.mubr.msk.bf16.vlgmr.msra.gmra.mxu0 %vm91_vm0, %v381_v42 }
  0x80   :  { %v74_v44 = vpop.permute.xlu0 %73 }
  0x81   :  { %v64_v45 = vpop.permute.xlu1 %63 }
  0x84   :  { %v79_v49 = vpop.permute.xlu0 %78 }
  0x85   :  { %v69_v52 = vpop.permute.xlu1 %68 }
  0x88   :  { %v184_v0 = vpop.permute.xlu0 %183 }
  0x89   :  { %v189_v3 = vpop.permute.xlu1 %188 }
  0x8c   :  { %v298_v14 = vpop.permute.xlu0 %297 }
  0x8d   :  { %v303_v15 = vrot.slane %v298_v14, %v302_v13 }
 0x104   :  { %v351_v46 = vpop.f32.mrf.mxu0 }
 0x105   :  { %v165_v48 = vadd.f32 %v351_v46, %v74_v44 }
 0x106   :  { %v156_v47 = vpop.f32.mrf.mxu0 }
 0x107   :  { %v173_v54 = vmax.f32 %v165_v48, 0.0  ;;  %v157_v55 = vadd.f32 %v156_v47, %v64_v45 }
 0x108   :  { %v352_v50 = vpop.f32.mrf.mxu0 }
 0x109   :  { %v168_v51 = vadd.f32 %v352_v50, %v79_v49  ;;  %v171_v60 = vmax.f32 %v157_v55, 0.0 }
 0x10a   :  { %v159_v53 = vpop.f32.mrf.mxu0 }
 0x10b   :  { %v174_v56 = vmax.f32 %v168_v51, 0.0  ;;  %v160_v57 = vadd.f32 %v159_v53, %v69_v52 }
 0x10d   :  { %v172_v58 = vmax.f32 %v160_v57, 0.0  ;;  %v178_v59 = vpack.c.bf16 %v174_v56, %v173_v54 }
 0x10f   :  { %354 = vmatpush3.bf16.msra.mxu1 %v178_v59  ;;  %v177_v61 = vpack.c.bf16 %v172_v58, %v171_v60 }
 0x110   :  { %355 = vmatprep.subr.bf16.mxu1 %v385_v43 }
 0x113   :  { %356 = vmatpush3.bf16.msra.mxu1 %v177_v61 }
 0x114   :  { %361 = vmatprep.subr.bf16.mxu1 %v385_v43 }
 0x116   :  { %358 = vmatmul.mubr.msk.bf16.vlgmr.msra.gmra.mxu1 %vm91_vm0, %v382_v62 }
 0x117   :  { %363 = vmatprep.mubr.msk.bf16.mxu1 %vm386_vm1, %v385_v43 }
 0x1d6   :  { %v233_v63 = vpop.f32.mrf.mxu1 }
 0x1d7   :  { %v234_v2 = vadd.f32 %v233_v63, %v184_v0 }
 0x1d8   :  { %v359_v1 = vpop.f32.mrf.mxu1 }
 0x1d9   :  { %v240_v7 = vmax.f32 %v234_v2, 0.0 }
 0x1da   :  { %v236_v4 = vpop.f32.mrf.mxu1 }
 0x1db   :  { %v237_v5 = vadd.f32 %v236_v4, %v189_v3 }
 0x1dc   :  { %v360_v6 = vpop.f32.mrf.mxu1 }
 0x1dd   :  { %v241_v8 = vmax.f32 %v237_v5, 0.0 }
 0x1df   :  { %v244_v9 = vpack.c.bf16 %v241_v8, %v240_v7 }
 0x1e1   :  { %362 = vmatpush3.bf16.msra.mxu1 %v244_v9 }
 0x1e4   :  { %364 = vmatmul.mubr.msk.bf16.vlgmr.msra.gmra.mxu1 %vm250_vm2, %v383_v10 }
 0x2a4   :  { %v288_v16 = vpop.f32.mrf.mxu1 }
 0x2a5   :  { %v304_v17 = vadd.f32 %v303_v15, %v288_v16 }
 0x2a6   :  { %v365_v18 = vpop.f32.mrf.mxu1 }
 0x2a7   :  { %305 = vst [vmem:[%s539_s7] sm:$0x1] %v304_v17 }
 0x2a8   :  { %v291_v19 = vpop.f32.mrf.mxu1 }
 0x2aa   :  { %v366_v20 = vpop.f32.mrf.mxu1 }

</bundles_post_ra>
